<compile_context>
chip_gen: v7x
topology: tpu7x:2x2x1
jax: 0.10.0
libtpu: 0.0.40
codegen_flags: <defaults>
</compile_context>

<pallas_src>
import jax
import jax.numpy as jnp
from jax.experimental import pallas as pl
from jax.experimental.pallas import tpu as pltpu

_LANES = 128
_SUBLANES = 8
_DEFAULT_MIN_PALLAS_ELEMENTS = 256 * 1024   # below this, XLA fusion wins


def _round_up(x: int, m: int) -> int:
    return ((x + m - 1) // m) * m


def _cdiv(a: int, b: int) -> int:
    return (a + b - 1) // b


def _detect_num_tensorcores() -> int:
    """2 TensorCores per chip on v7x, 1 on v5e/v6e (defensive default 1)."""
    try:
        kind = jax.devices()[0].device_kind.lower()
    except Exception:
        return 1
    return 2 if ("v7" in kind or "7x" in kind) else 1


def _bce_with_logits(x, z):
    # Numerically stable BCE-with-logits, elementwise (VPU + EUP).
    return jnp.maximum(x, 0.0) - x * z + jnp.log1p(jnp.exp(-jnp.abs(x)))


def _make_kernel(n_rows: int, tile_rows: int, steps_per_split: int, width: int):
    """Kernel factory closing over static shape parameters."""

    def kernel(x_ref, z_ref, out_ref):
        c = pl.program_id(0)          # core-split index (parallel axis)
        i = pl.program_id(1)          # streaming reduction step

        @pl.when(i == 0)
        def _():
            out_ref[...] = jnp.zeros_like(out_ref)

        x = x_ref[...].astype(jnp.float32)    # logits  (y_pred)
        z = z_ref[...].astype(jnp.float32)    # targets (y[LOGITS])
        elem = _bce_with_logits(x, z)

        # Mask rows past the end of the real data: covers (a) the ragged last
        # row-tile (partial block -> unspecified tail data) and (b) "ghost"
        # tiles of an uneven core split whose index_map was clamped.  A select
        # kills any NaN/Inf garbage from the unspecified region.
        start = (c * steps_per_split + i) * tile_rows      # traced scalar
        valid = n_rows - start                              # may be <=0 (ghost)
        row = jax.lax.broadcasted_iota(jnp.int32, elem.shape, 0)
        elem = jnp.where(row < valid, elem, 0.0)

        # (tile_rows, W) -> (tile_rows//8, 8, W); summing the leading axis is
        # pure vreg-wise VPU adds -- no per-step cross-lane XLU reduction.
        out_ref[...] += jnp.sum(
            elem.reshape(tile_rows // _SUBLANES, _SUBLANES, width), axis=0)

    return kernel


def sigmoid_cross_entropy_loss(
    y_pred: jax.Array,
    target: jax.Array,
    *,
    tile_rows: int | None = None,
    num_splits: int | None = None,
    min_pallas_elements: int = _DEFAULT_MIN_PALLAS_ELEMENTS,
) -> jax.Array:
    """Pallas implementation of ludwig's SigmoidCrossEntropyLoss.forward.

    y_pred: [B, C] logits (2D required, mirroring the torch RuntimeError check)
    target: [B, C] targets (the y[LOGITS] tensor in the torch module)
    Pass inputs in their native dtype (bf16 is fine and halves HBM traffic);
    the kernel accumulates in float32.  Returns a scalar float32 loss.
    """
    if y_pred.ndim != 2:
        raise RuntimeError(
            'SigmoidCrossEntropyLoss currently supported for 2D tensors.')
    if target.shape != y_pred.shape:
        raise ValueError('y_pred and target must have the same shape.')
    B, C = y_pred.shape
    total = B * C

    # ---- tiny inputs: pallas_call launch/pipeline overhead dominates -------
    if total < min_pallas_elements:
        elem = _bce_with_logits(y_pred.astype(jnp.float32),
                                target.astype(jnp.float32))
        return jnp.mean(jnp.sum(elem, axis=1))

    # ---- copy-free 2D view (no concatenate, no padding pass) ---------------
    if total % _LANES == 0:
        # Lane-dense repack via a free row-major reshape.
        width = _LANES
        n_rows = total // _LANES
        x2 = y_pred.reshape(n_rows, width)
        z2 = target.reshape(n_rows, width)
    else:
        # C not lane-alignable: stream [B, C] directly; block last dim = C
        # (equal to the full array dim, so the (8,128) rule is satisfied).
        width = C
        n_rows = B
        x2 = y_pred
        z2 = target

    # ---- tile sizing from the f32 working set (~2 MiB of f32 per block) ----
    if tile_rows is None:
        tile_rows = (2 << 20) // (width * 4)
    tile_rows = max(_SUBLANES, (tile_rows // _SUBLANES) * _SUBLANES)
    tile_rows = min(tile_rows, _round_up(n_rows, _SUBLANES))

    steps_total = _cdiv(n_rows, tile_rows)

    if num_splits is None:
        num_splits = _detect_num_tensorcores()
    num_splits = max(1, min(num_splits, steps_total))
    steps_per_split = _cdiv(steps_total, num_splits)

    def in_map(c, i):
        # Clamp ghost tiles (uneven split) onto the last real tile; the kernel
        # masks their contribution to exactly zero.
        return (jnp.minimum(c * steps_per_split + i, steps_total - 1), 0)

    kernel = _make_kernel(n_rows, tile_rows, steps_per_split, width)

    in_bytes = total * (jnp.dtype(y_pred.dtype).itemsize
                        + jnp.dtype(target.dtype).itemsize)
    cost = pl.CostEstimate(
        flops=8 * total,
        transcendentals=2 * total,
        bytes_accessed=in_bytes + num_splits * _SUBLANES * width * 4,
    )

    def run(leading_sem):
        return pl.pallas_call(
            kernel,
            out_shape=jax.ShapeDtypeStruct((num_splits * _SUBLANES, width),
                                           jnp.float32),
            grid_spec=pltpu.PrefetchScalarGridSpec(
                num_scalar_prefetch=0,
                grid=(num_splits, steps_per_split),
                in_specs=[
                    pl.BlockSpec((tile_rows, width), in_map),   # logits tiles
                    pl.BlockSpec((tile_rows, width), in_map),   # target tiles
                ],
                # One resident (8, width) accumulator block per split.
                out_specs=pl.BlockSpec((_SUBLANES, width), lambda c, i: (c, 0)),
            ),
            compiler_params=pltpu.CompilerParams(
                dimension_semantics=(leading_sem, pltpu.ARBITRARY),
                vmem_limit_bytes=32 << 20),
            cost_estimate=cost,
        )(x2, z2)

    # On v7x the kernel is EUP-bound; CORE_PARALLEL is the only semantics that
    # changes codegen and guarantees both TensorCores' EUPs are engaged.
    semantics_to_try = [pltpu.PARALLEL]
    core_parallel = getattr(pltpu, "CORE_PARALLEL", None)
    if (core_parallel is not None and num_splits >= 2
            and _detect_num_tensorcores() >= 2):
        semantics_to_try.insert(0, core_parallel)

    partials = None
    last_err = None
    for sem in semantics_to_try:
        try:
            partials = run(sem)
            break
        except Exception as e:          # fall back to PARALLEL if rejected
            last_err = e
    if partials is None:
        raise last_err

    # Tiny final reduction + mean over batch in the wrapper (f32).
    return jnp.sum(partials) * jnp.float32(1.0 / B)


def _reference(y_pred, target):
    x = y_pred.astype(jnp.float32)
    z = target.astype(jnp.float32)
    elem = jnp.maximum(x, 0.0) - x * z + jnp.log1p(jnp.exp(-jnp.abs(x)))
    return jnp.mean(jnp.sum(elem, axis=1))


if __name__ == "__main__":
    key = jax.random.PRNGKey(0)
    ks = jax.random.split(key, 8)

    def check(y_pred, target, **kw):
        got = jax.block_until_ready(
            sigmoid_cross_entropy_loss(y_pred, target, **kw))
        want = jax.block_until_ready(_reference(y_pred, target))
        assert jnp.allclose(got, want, rtol=2e-4, atol=2e-4), (kw, got, want)

    # 1) Tiny multi-label head (B=8, C=12): pure-JAX fast path.
    yp = jax.random.normal(ks[0], (8, 12), jnp.float32) * 2.0
    tg = jax.random.bernoulli(ks[1], 0.3, (8, 12)).astype(jnp.float32)
    check(yp, tg)

    # 2) Same tiny shape forced through the Pallas kernel
    #    (total % 128 != 0 -> [B, C] path, single full block).
    check(yp, tg, min_pallas_elements=0)

    # 3) Lane-aligned bf16 inputs streamed natively (flattened [rows,128] path).
    yp2 = (jax.random.normal(ks[2], (16, 128), jnp.float32) * 2.0
           ).astype(jnp.bfloat16)
    tg2 = jax.random.bernoulli(ks[3], 0.3, (16, 128)).astype(jnp.bfloat16)
    check(yp2, tg2, min_pallas_elements=0)

    # 4) Flattened path with a ragged last row-tile + 2-way split
    #    (exercises in-kernel row masking and per-split accumulators).
    yp3 = jax.random.normal(ks[4], (48, 64), jnp.float32)
    tg3 = jax.random.bernoulli(ks[5], 0.5, (48, 64)).astype(jnp.float32)
    check(yp3, tg3, min_pallas_elements=0, tile_rows=16, num_splits=2)

    # 5) Non-lane-alignable C, ragged tile + uneven split (ghost-tile clamp).
    yp4 = jax.random.normal(ks[6], (40, 100), jnp.float32)
    tg4 = jax.random.bernoulli(ks[7], 0.2, (40, 100)).astype(jnp.float32)
    check(yp4, tg4, min_pallas_elements=0, tile_rows=16, num_splits=2)

    print("KERNEL_OK")
</pallas_src>

<mosaic_0001>
module attributes {stable_mosaic.version = 11 : i64} {
  func.func @kernel(%arg0: i32, %arg1: i32, %arg2: memref<8x12xf32, #tpu.memory_space<vmem>>, %arg3: memref<8x12xf32, #tpu.memory_space<vmem>>, %arg4: memref<8x12xf32, #tpu.memory_space<vmem>>) attributes {dimension_semantics = [#tpu.dimension_semantics<parallel>, #tpu.dimension_semantics<arbitrary>], iteration_bounds = array<i64: 1, 1>, scalar_prefetch = 0 : i64, scratch_operands = 0 : i64, tpu.core_type = #tpu.core_type<tc>, window_params = [{transform_indices = @transform_0, window_bounds = array<i64: 8, 12>}, {transform_indices = @transform_1, window_bounds = array<i64: 8, 12>}, {transform_indices = @transform_2, window_bounds = array<i64: 8, 12>}]} {
    %c0_i32 = arith.constant 0 : i32
    %0 = arith.cmpi eq, %arg1, %c0_i32 : i32
    %1 = arith.extui %0 : i1 to i32
    %c0_i32_0 = arith.constant 0 : i32
    %2 = arith.cmpi ne, %1, %c0_i32_0 : i32
    scf.if %2 {
      %cst_12 = arith.constant 0.000000e+00 : f32
      %29 = vector.broadcast %cst_12 : f32 to vector<8x12xf32>
      %c0_13 = arith.constant 0 : index
      %c0_14 = arith.constant 0 : index
      %30 = vector.load %arg4[%c0_13, %c0_14] : memref<8x12xf32, #tpu.memory_space<vmem>>, vector<8x12xf32>
      tpu.vector_store %arg4[%c0_13, %c0_14], %29 {strides = array<i32>} : memref<8x12xf32, #tpu.memory_space<vmem>>, vector<8x12xf32>,
    } else {
    }
    %c0 = arith.constant 0 : index
    %c0_1 = arith.constant 0 : index
    %3 = vector.load %arg2[%c0, %c0_1] : memref<8x12xf32, #tpu.memory_space<vmem>>, vector<8x12xf32>
    %c0_2 = arith.constant 0 : index
    %c0_3 = arith.constant 0 : index
    %4 = vector.load %arg3[%c0_2, %c0_3] : memref<8x12xf32, #tpu.memory_space<vmem>>, vector<8x12xf32>
    %cst = arith.constant 0.000000e+00 : f32
    %5 = vector.broadcast %cst : f32 to vector<8x12xf32>
    %6 = arith.maximumf %3, %5 : vector<8x12xf32>
    %7 = arith.mulf %3, %4 : vector<8x12xf32>
    %8 = arith.subf %6, %7 : vector<8x12xf32>
    %9 = math.absf %3 : vector<8x12xf32>
    %cst_4 = arith.constant 0.000000e+00 : f32
    %10 = vector.broadcast %cst_4 : f32 to vector<8x12xf32>
    %11 = arith.subf %10, %9 : vector<8x12xf32>
    %12 = math.exp %11 : vector<8x12xf32>
    %13 = math.log1p %12 : vector<8x12xf32>
    %14 = arith.addf %8, %13 : vector<8x12xf32>
    %c1_i32 = arith.constant 1 : i32
    %15 = arith.muli %arg0, %c1_i32 : i32
    %16 = arith.addi %15, %arg1 : i32
    %c8_i32 = arith.constant 8 : i32
    %17 = arith.muli %16, %c8_i32 : i32
    %c8_i32_5 = arith.constant 8 : i32
    %18 = arith.subi %c8_i32_5, %17 : i32
    %19 = tpu.iota {dimensions = array<i32: 0>} : vector<8x12xi32>
    %20 = vector.broadcast %18 : i32 to vector<8x12xi32>
    %21 = arith.cmpi slt, %19, %20 : vector<8x12xi32>
    %cst_6 = arith.constant 0.000000e+00 : f32
    %22 = vector.broadcast %cst_6 : f32 to vector<8x12xf32>
    %23 = arith.select %21, %14, %22 : vector<8x12xi1>, vector<8x12xf32>
    %c0_7 = arith.constant 0 : index
    %c0_8 = arith.constant 0 : index
    %24 = vector.load %arg4[%c0_7, %c0_8] : memref<8x12xf32, #tpu.memory_space<vmem>>, vector<8x12xf32>
    %25 = vector.shape_cast %23 : vector<8x12xf32> to vector<1x8x12xf32>
    %cst_9 = arith.constant dense<0.000000e+00> : vector<8x12xf32>
    %26 = vector.multi_reduction <add>, %25, %cst_9 [0] : vector<1x8x12xf32> to vector<8x12xf32>
    %27 = arith.addf %24, %26 : vector<8x12xf32>
    %c0_10 = arith.constant 0 : index
    %c0_11 = arith.constant 0 : index
    %28 = vector.load %arg4[%c0_10, %c0_11] : memref<8x12xf32, #tpu.memory_space<vmem>>, vector<8x12xf32>
    tpu.vector_store %arg4[%c0_10, %c0_11], %27 {strides = array<i32>} : memref<8x12xf32, #tpu.memory_space<vmem>>, vector<8x12xf32>,
    return
  }
  func.func @transform_0(%arg0: i32, %arg1: i32) -> (i32, i32) {
    %c1_i32 = arith.constant 1 : i32
    %0 = arith.muli %arg0, %c1_i32 : i32
    %1 = arith.addi %0, %arg1 : i32
    %c0_i32 = arith.constant 0 : i32
    %2 = arith.minsi %1, %c0_i32 : i32
    %c0_i32_0 = arith.constant 0 : i32
    %c0_i32_1 = arith.constant 0 : i32
    return %2, %c0_i32_0 : i32, i32
  }
  func.func @transform_1(%arg0: i32, %arg1: i32) -> (i32, i32) {
    %c1_i32 = arith.constant 1 : i32
    %0 = arith.muli %arg0, %c1_i32 : i32
    %1 = arith.addi %0, %arg1 : i32
    %c0_i32 = arith.constant 0 : i32
    %2 = arith.minsi %1, %c0_i32 : i32
    %c0_i32_0 = arith.constant 0 : i32
    %c0_i32_1 = arith.constant 0 : i32
    return %2, %c0_i32_0 : i32, i32
  }
  func.func @transform_2(%arg0: i32, %arg1: i32) -> (i32, i32) {
    %c0_i32 = arith.constant 0 : i32
    %c0_i32_0 = arith.constant 0 : i32
    return %arg0, %c0_i32 : i32, i32
  }
}

</mosaic_0001>

<bundles_post_ra>
// kernel: tpu_custom_call.1
= control target key start
LH: loop header
LB: loop body
LE: loop exit
PB: predicated region body
PF: predicated region fallthrough
CT: control target
= control target key end

     0   :  { %7 = vsyncpa [#allocation3], 0  ;;  %s247_s0 = inlined_call_operand.hbm [shape: f32[8,12], index: 0, kind: input, shape index: {}]   ;;  %s248_s1 = inlined_call_operand.hbm [shape: f32[8,12], index: 1, kind: input, shape index: {}]   ;;  %s249_s2 = inlined_call_operand.hbm [shape: f32[8,12], index: 2, kind: output, shape index: {}]  }
   0x1   :  { %8 = vsyncpa [#allocation6], 0 }
   0x2   :  { %9 = vsyncpa [#allocation4], 0  ;;  %s190_s9 = smov [#allocation2]   ;;  %s191_s11 = smov [#allocation5]  }
   0x3   :  { %s21_s10 = sshll.u32 %s190_s9, 4  ;;  %s36_s12 = sshll.u32 %s191_s11, 4  ;;  %s22_s10 = int_to_ptr.vmem [resolvable:$true] %s21_s10  ;;  %s37_s12 = int_to_ptr.vmem [resolvable:$true] %s36_s12 }
   0x4   :  { %s118_s15 = scalar_lea.hbm %s247_s0, 128 }
   0x5   :  { %p119_p0 = scmp.ne.s32.totalorder %s247_s0, %s118_s15  ;;  %p122_p1 = scmp.lt.u32.totalorder %s118_s15, %s247_s0 }
   0x7   :  { %p124_p2 = pnand %p122_p1, %p119_p0 }
   0x9   :  { %127 = shalt.err (!%p124_p2)
}
   0xa   :  { %s128_s20 = scalar_lea.vmem %s22_s10, 128  ;;  %p133_p4 = scmp.lt.s32.totalorder %s22_s10, %s22_s10 }
   0xb   :  { %p129_p3 = scmp.ne.s32.totalorder %s22_s10, %s128_s20  ;;  %p134_p5 = scmp.lt.s32.totalorder %s128_s20, %s128_s20 }
   0xd   :  { %p135_p6 = por %p134_p5, %p133_p4 }
   0xf   :  { %p136_p7 = pnand %p135_p6, %p129_p3 }
  0x11   :  { %139 = shalt.err (!%p136_p7)
}
  0x12   :  { %24 = dma.hbm_to_vmem [thread:$0]  %s247_s0, 128, %s22_s10, [#allocation3]  }
  0x13   :  { %s140_s25 = scalar_lea.hbm %s248_s1, 128 }
  0x14   :  { %p141_p8 = scmp.ne.s32.totalorder %s248_s1, %s140_s25  ;;  %p144_p9 = scmp.lt.u32.totalorder %s140_s25, %s248_s1 }
  0x16   :  { %p146_p10 = pnand %p144_p9, %p141_p8 }
  0x18   :  { %149 = shalt.err (!%p146_p10)
}
  0x19   :  { %s150_s30 = scalar_lea.vmem %s37_s12, 128  ;;  %p155_p12 = scmp.lt.s32.totalorder %s37_s12, %s37_s12 }
  0x1a   :  { %p151_p11 = scmp.ne.s32.totalorder %s37_s12, %s150_s30  ;;  %p156_p13 = scmp.lt.s32.totalorder %s150_s30, %s150_s30 }
  0x1c   :  { %p157_p0 = por %p156_p13, %p155_p12 }
  0x1e   :  { %p158_p1 = pnand %p157_p0, %p151_p11 }
  0x20   :  { %161 = shalt.err (!%p158_p1)
}
  0x21   :  { %39 = dma.hbm_to_vmem [thread:$0]  %s248_s1, 128, %s37_s12, [#allocation6]  }
  0x22   :  { %184 = dma.done.wait [#allocation3], 128  }
  0x23   :  { %185 = vsyncadd [#allocation3], 4294967168 }
  0x24   :  { %186 = dma.done.wait [#allocation6], 128  }
  0x25   :  { %187 = vsyncadd [#allocation6], 4294967168  ;;  %vm56_vm0 = vcmask 97280   ;;  %v192_v0 = vmov 0.0   ;;  %v58_v1 = vld [vmem:[#allocation2] sm:$0xff]  ;;  %v59_v8 = vld [vmem:[#allocation5] sm:$0xff] }
  0x26   :  { %57 = vst.msk [vmem:[#allocation7] sm:$0xff] %vm56_vm0, %v192_v0  ;;  %v63_v2 = vand.u32 2147483647, %v58_v1  ;;  %v60_v10 = vmax.f32 %v58_v1, 0.0  ;;  %v61_v11 = vmul.f32 %v59_v8, %v58_v1  ;;  %s193_s1 = smov [#allocation7]  }
  0x27   :  { %s96_s4 = sshll.u32 %s193_s1, 4  ;;  %s97_s4 = int_to_ptr.vmem [resolvable:$true] %s96_s4 }
  0x28   :  { %v64_v3 = vsub.f32 0.0, %v63_v2  ;;  %v62_v15 = vsub.f32 %v60_v10, %v61_v11  ;;  %s162_s5 = scalar_lea.vmem %s97_s4, 128  ;;  %p167_p3 = scmp.lt.s32.totalorder %s97_s4, %s97_s4 }
  0x29   :  { %p163_p2 = scmp.ne.s32.totalorder %s97_s4, %s162_s5  ;;  %p168_p4 = scmp.lt.s32.totalorder %s162_s5, %s162_s5 }
  0x2a   :  { %v65_v4 = vmul.f32 1.442695, %v64_v3 }
  0x2b   :  { %p169_p5 = por %p168_p4, %p167_p3 }
  0x2c   :  { %114 = vpow2.f32 %v65_v4 }
  0x2d   :  { %v85_v18 = vld [vmem:[#allocation7] sm:$0xff]  ;;  %p170_p6 = pnand %p169_p5, %p163_p2 }
  0x36   :  { %v115_v5 = vpop.eup %114 }
  0x37   :  { %v67_v6 = vadd.f32 1.0, %v115_v5  ;;  %v70_v7 = vmul.f32 -0.5, %v115_v5  ;;  %v73_v12 = vand.u32 2147483647, %v115_v5 }
  0x39   :  { %116 = vlog2.f32 %v67_v6  ;;  %v71_v9 = vadd.f32 1.0, %v70_v7  ;;  %vm74_vm1 = vcmp.lt.f32.partialorder %v73_v12, 0.0004427343 }
  0x3b   :  { %v72_v13 = vmul.f32 %v115_v5, %v71_v9 }
  0x43   :  { %v117_v14 = vpop.eup %116 }
  0x44   :  { %v69_v16 = vmul.f32 0.6931472, %v117_v14 }
  0x46   :  { %v75_v17 = vsel %vm74_vm1, %v72_v13, %v69_v16 }
  0x47   :  { %v76_v19 = vadd.f32 %v75_v17, %v62_v15 }
  0x49   :  { %v87_v20 = vadd.f32 %v85_v18, %v76_v19 }
  0x4b   :  { %89 = vst.msk [vmem:[#allocation7] sm:$0xff] %vm56_vm0, %v87_v20 }
  0x4c   :  { %173 = shalt.err (!%p170_p6)
}
  0x4d   :  { %s174_s8 = scalar_lea.hbm %s249_s2, 128 }
  0x4e   :  { %p175_p7 = scmp.ne.s32.totalorder %s249_s2, %s174_s8  ;;  %p178_p8 = scmp.lt.u32.totalorder %s174_s8, %s249_s2 }
  0x50   :  { %p180_p9 = pnand %p178_p8, %p175_p7 }
  0x52   :  { %183 = shalt.err (!%p180_p9)
}
  0x53   :  { %99 = dma.vmem_to_hbm [thread:$0]  %s97_s4, 128, %s249_s2, [#allocation4]  }
  0x54   :  { %188 = dma.done.wait [#allocation4], 128  }
  0x55   :  { %189 = vsyncadd [#allocation4], 4294967168 }
  0x56   :  { %103 = vsyncpa [#allocation3], 1 }
  0x57   :  { %104 = vsyncpa [#allocation6], 1 }
  0x58   :  { %105 = vsyncpa [#allocation4], 1 }

</bundles_post_ra>
